<compile_context>
chip_gen: v6e
topology: v6e:2x2x1
jax: 0.10.0
libtpu: 0.0.40
codegen_flags: <defaults>
</compile_context>

<pallas_src>
import functools

import jax
import jax.numpy as jnp
from jax.experimental import pallas as pl
from jax.experimental.pallas import tpu as pltpu


def mlp_kernel(x_ref, w1_ref, b1_ref, w2_ref, b2_ref, out_ref):
    # x_ref:  (4, TB)   compute dtype (bf16 or f32), batch on lanes
    # w1_ref: (10, 4)   compute dtype   b1_ref: (10, 1) f32
    # w2_ref: (3, 10)   compute dtype   b2_ref: (3, 1)  f32
    # out_ref:(3, TB)   compute dtype
    x = x_ref[...]

    # fc1: (10, 4) @ (4, TB) -> (10, TB); f32 MXU accumulation, f32 bias/ReLU.
    h = jnp.dot(w1_ref[...], x, preferred_element_type=jnp.float32) + b1_ref[...]
    h = jnp.maximum(h, 0.0)

    # fc2: (3, 10) @ (10, TB) -> (3, TB); cast activations to weight dtype
    # for the MXU, keep f32 accumulation.
    y = jnp.dot(w2_ref[...], h.astype(w2_ref.dtype),
                preferred_element_type=jnp.float32) + b2_ref[...]

    out_ref[...] = y.astype(out_ref.dtype)


def _round_up(v, m):
    return -(-v // m) * m


def _pick_batch_tile(B, block_b):
    """Pick the lane (batch) tile.

    - multiple of 128 (or the full B when B < 256: a full-extent block is
      exempt from the 128-lane rule),
    - capped by block_b (VMEM budget: ~100 bytes of VMEM per batch element,
      so the 256K default tile is ~26 MB, under the 48 MiB vmem limit),
    - best-effort even number of grid steps (>= 2) so v7x's two TensorCores
      get balanced work under dimension_semantics=("parallel",); no effect
      on single-TC v5e/v6e beyond negligible extra step overhead.
    """
    if B < 256:
        return B
    cap = max(128, (min(block_b, B) // 128) * 128)
    n = -(-B // cap)              # steps needed at the VMEM cap
    if n % 2 == 1:
        n += 1                    # force an even (>=2) grid for megacore balance
    tb = min(_round_up(-(-B // n), 128), cap)
    return tb


def _mlp_pallas_fb(x_fb, w1, b1, w2, b2, tb, compute_dtype):
    """Core pallas_call.  x_fb: (4, B) compute_dtype.  Returns (3, B) compute_dtype."""
    B = x_fb.shape[1]

    grid_spec = pltpu.PrefetchScalarGridSpec(
        num_scalar_prefetch=0,
        grid=(pl.cdiv(B, tb),),
        in_specs=[
            pl.BlockSpec((4, tb), lambda i: (0, i)),     # x tile (streamed)
            pl.BlockSpec((10, 4), lambda i: (0, 0)),     # w1 (VMEM-resident)
            pl.BlockSpec((10, 1), lambda i: (0, 0)),     # b1 (resident)
            pl.BlockSpec((3, 10), lambda i: (0, 0)),     # w2 (resident)
            pl.BlockSpec((3, 1), lambda i: (0, 0)),      # b2 (resident)
        ],
        out_specs=pl.BlockSpec((3, tb), lambda i: (0, i)),
    )

    return pl.pallas_call(
        mlp_kernel,
        out_shape=jax.ShapeDtypeStruct((3, B), compute_dtype),
        grid_spec=grid_spec,
        compiler_params=pltpu.CompilerParams(
            dimension_semantics=("parallel",),
            vmem_limit_bytes=48 * 1024 * 1024,
        ),
    )(
        x_fb,
        w1.astype(compute_dtype),                       # (10, 4)
        b1.reshape(-1, 1).astype(jnp.float32),          # (10, 1)
        w2.astype(compute_dtype),                       # (3, 10)
        b2.reshape(-1, 1).astype(jnp.float32),          # (3, 1)
    )


@functools.partial(jax.jit, static_argnames=("block_b", "compute_dtype"))
def mlp_forward_fb(x_fb, w1, b1, w2, b2, *, block_b=262144,
                   compute_dtype=jnp.bfloat16):
    """Zero-transpose fast path.  x_fb: (4, B) feature-major.  Returns (3, B)
    in compute_dtype.  Weights/biases in native PyTorch layouts."""
    B = x_fb.shape[1]
    tb = _pick_batch_tile(B, block_b)
    return _mlp_pallas_fb(x_fb.astype(compute_dtype), w1, b1, w2, b2, tb,
                          compute_dtype)


@functools.partial(jax.jit, static_argnames=("block_b", "compute_dtype", "out_dtype"))
def mlp_forward(x, w1, b1, w2, b2, *, block_b=262144,
                compute_dtype=jnp.bfloat16, out_dtype=jnp.float32):
    """Drop-in PyTorch layout.  x: (B, 4) -> (B, 3) in out_dtype.
    w1: (10, 4), b1: (10,), w2: (3, 10), b2: (3,) (native nn.Linear layouts).
    Prefer mlp_forward_fb when the caller can keep a feature-major layout."""
    B = x.shape[0]
    tb = _pick_batch_tile(B, block_b)
    x_fb = jnp.transpose(x).astype(compute_dtype)        # (4, B) -- one pass
    y_fb = _mlp_pallas_fb(x_fb, w1, b1, w2, b2, tb, compute_dtype)
    return jnp.transpose(y_fb).astype(out_dtype)         # (B, 3)


def init_params(key):
    k1, k2, k3, k4 = jax.random.split(key, 4)
    w1 = jax.random.normal(k1, (10, 4), dtype=jnp.float32) * 0.5   # fc1.weight
    b1 = jax.random.normal(k2, (10,), dtype=jnp.float32) * 0.1     # fc1.bias
    w2 = jax.random.normal(k3, (3, 10), dtype=jnp.float32) * 0.5   # fc2.weight
    b2 = jax.random.normal(k4, (3,), dtype=jnp.float32) * 0.1      # fc2.bias
    return w1, b1, w2, b2


if __name__ == "__main__":
    key = jax.random.PRNGKey(0)
    kp, kx1, kx2 = jax.random.split(key, 3)
    w1, b1, w2, b2 = init_params(kp)

    def ref_mlp(x):
        return jnp.maximum(x @ w1.T + b1, 0.0) @ w2.T + b2

    # --- small batch, PyTorch-layout wrapper: f32 exact + bf16 loose --------
    x = jax.random.normal(kx1, (8, 4), dtype=jnp.float32)
    ref = ref_mlp(x)

    out_f32 = jax.block_until_ready(
        mlp_forward(x, w1, b1, w2, b2, compute_dtype=jnp.float32))
    assert out_f32.shape == (8, 3)
    assert jnp.allclose(out_f32, ref, atol=1e-5, rtol=1e-5)

    out_bf16 = jax.block_until_ready(
        mlp_forward(x, w1, b1, w2, b2, compute_dtype=jnp.bfloat16))
    assert out_bf16.shape == (8, 3)
    assert jnp.allclose(out_bf16, ref, atol=5e-2, rtol=5e-2)

    # --- zero-transpose feature-major fast path ------------------------------
    y_fb = jax.block_until_ready(
        mlp_forward_fb(jnp.transpose(x), w1, b1, w2, b2,
                       compute_dtype=jnp.float32))
    assert y_fb.shape == (3, 8)
    assert jnp.allclose(jnp.transpose(y_fb), ref, atol=1e-5, rtol=1e-5)

    # --- ragged batch with a multi-step grid (partial last block path) -------
    xr = jax.random.normal(kx2, (333, 4), dtype=jnp.float32)
    refr = ref_mlp(xr)
    outr = jax.block_until_ready(
        mlp_forward(xr, w1, b1, w2, b2, block_b=128, compute_dtype=jnp.float32))
    assert outr.shape == (333, 3)
    assert jnp.allclose(outr, refr, atol=1e-5, rtol=1e-5)

    print("KERNEL_OK")
</pallas_src>

<mosaic_0001>
module attributes {stable_mosaic.version = 11 : i64} {
  func.func @mlp_kernel(%arg0: i32, %arg1: memref<4x8xf32, #tpu.memory_space<vmem>>, %arg2: memref<10x4xf32, #tpu.memory_space<vmem>>, %arg3: memref<10x1xf32, #tpu.memory_space<vmem>>, %arg4: memref<3x10xf32, #tpu.memory_space<vmem>>, %arg5: memref<3x1xf32, #tpu.memory_space<vmem>>, %arg6: memref<3x8xf32, #tpu.memory_space<vmem>>) attributes {dimension_semantics = [#tpu.dimension_semantics<parallel>], iteration_bounds = array<i64: 1>, scalar_prefetch = 0 : i64, scratch_operands = 0 : i64, tpu.core_type = #tpu.core_type<tc>, window_params = [{transform_indices = @transform_0, window_bounds = array<i64: 4, 8>}, {pipeline_mode = #tpu.pipeline_mode<synchronous>, transform_indices = @transform_1, window_bounds = array<i64: 10, 4>}, {pipeline_mode = #tpu.pipeline_mode<synchronous>, transform_indices = @transform_2, window_bounds = array<i64: 10, 1>}, {pipeline_mode = #tpu.pipeline_mode<synchronous>, transform_indices = @transform_3, window_bounds = array<i64: 3, 10>}, {pipeline_mode = #tpu.pipeline_mode<synchronous>, transform_indices = @transform_4, window_bounds = array<i64: 3, 1>}, {transform_indices = @transform_5, window_bounds = array<i64: 3, 8>}]} {
    %c0 = arith.constant 0 : index
    %c0_0 = arith.constant 0 : index
    %0 = vector.load %arg1[%c0, %c0_0] : memref<4x8xf32, #tpu.memory_space<vmem>>, vector<4x8xf32>
    %c0_1 = arith.constant 0 : index
    %c0_2 = arith.constant 0 : index
    %1 = vector.load %arg2[%c0_1, %c0_2] : memref<10x4xf32, #tpu.memory_space<vmem>>, vector<10x4xf32>
    %cst = arith.constant dense<0.000000e+00> : vector<10x8xf32>
    %2 = tpu.matmul %1, %0, %cst {dimension_numbers = #tpu.dot_dimension_numbers<[1], [0], [0], [1], [0, 0, 1, 1], [], []>} : vector<10x4xf32>, vector<4x8xf32>, vector<10x8xf32> -> vector<10x8xf32>
    %c0_3 = arith.constant 0 : index
    %c0_4 = arith.constant 0 : index
    %3 = vector.load %arg3[%c0_3, %c0_4] : memref<10x1xf32, #tpu.memory_space<vmem>>, vector<10x1xf32>
    %4 = vector.broadcast %3 : vector<10x1xf32> to vector<10x8xf32>
    %5 = arith.addf %2, %4 : vector<10x8xf32>
    %cst_5 = arith.constant 0.000000e+00 : f32
    %6 = vector.broadcast %cst_5 : f32 to vector<10x8xf32>
    %7 = arith.maximumf %5, %6 : vector<10x8xf32>
    %c0_6 = arith.constant 0 : index
    %c0_7 = arith.constant 0 : index
    %8 = vector.load %arg4[%c0_6, %c0_7] : memref<3x10xf32, #tpu.memory_space<vmem>>, vector<3x10xf32>
    %cst_8 = arith.constant dense<0.000000e+00> : vector<3x8xf32>
    %9 = tpu.matmul %8, %7, %cst_8 {dimension_numbers = #tpu.dot_dimension_numbers<[1], [0], [0], [1], [0, 0, 1, 1], [], []>} : vector<3x10xf32>, vector<10x8xf32>, vector<3x8xf32> -> vector<3x8xf32>
    %c0_9 = arith.constant 0 : index
    %c0_10 = arith.constant 0 : index
    %10 = vector.load %arg5[%c0_9, %c0_10] : memref<3x1xf32, #tpu.memory_space<vmem>>, vector<3x1xf32>
    %11 = vector.broadcast %10 : vector<3x1xf32> to vector<3x8xf32>
    %12 = arith.addf %9, %11 : vector<3x8xf32>
    %c0_11 = arith.constant 0 : index
    %c0_12 = arith.constant 0 : index
    %13 = vector.load %arg6[%c0_11, %c0_12] : memref<3x8xf32, #tpu.memory_space<vmem>>, vector<3x8xf32>
    tpu.vector_store %arg6[%c0_11, %c0_12], %12 {strides = array<i32>} : memref<3x8xf32, #tpu.memory_space<vmem>>, vector<3x8xf32>,
    return
  }
  func.func @transform_0(%arg0: i32) -> (i32, i32) {
    %c0_i32 = arith.constant 0 : i32
    %c0_i32_0 = arith.constant 0 : i32
    return %c0_i32, %arg0 : i32, i32
  }
  func.func @transform_1(%arg0: i32) -> (i32, i32) {
    %c0_i32 = arith.constant 0 : i32
    %c0_i32_0 = arith.constant 0 : i32
    %c0_i32_1 = arith.constant 0 : i32
    return %c0_i32, %c0_i32_0 : i32, i32
  }
  func.func @transform_2(%arg0: i32) -> (i32, i32) {
    %c0_i32 = arith.constant 0 : i32
    %c0_i32_0 = arith.constant 0 : i32
    %c0_i32_1 = arith.constant 0 : i32
    return %c0_i32, %c0_i32_0 : i32, i32
  }
  func.func @transform_3(%arg0: i32) -> (i32, i32) {
    %c0_i32 = arith.constant 0 : i32
    %c0_i32_0 = arith.constant 0 : i32
    %c0_i32_1 = arith.constant 0 : i32
    return %c0_i32, %c0_i32_0 : i32, i32
  }
  func.func @transform_4(%arg0: i32) -> (i32, i32) {
    %c0_i32 = arith.constant 0 : i32
    %c0_i32_0 = arith.constant 0 : i32
    %c0_i32_1 = arith.constant 0 : i32
    return %c0_i32, %c0_i32_0 : i32, i32
  }
  func.func @transform_5(%arg0: i32) -> (i32, i32) {
    %c0_i32 = arith.constant 0 : i32
    %c0_i32_0 = arith.constant 0 : i32
    return %c0_i32, %arg0 : i32, i32
  }
}

</mosaic_0001>

<bundles_post_ra>
// kernel: mlp_forward.1
= control target key start
LH: loop header
LB: loop body
LE: loop exit
PB: predicated region body
PF: predicated region fallthrough
CT: control target
= control target key end

     0   :  { %vm43_vm0 = vcmask 1043456   ;;  %vm36_vm1 = vcmask 31744   ;;  %v276_v4 = vmov 0   ;;  %s334_s0 = inlined_call_operand.vmem [shape: f32[4,8], index: 0, kind: input, shape index: {}]   ;;  %s335_s1 = inlined_call_operand.vmem [shape: f32[10,4], index: 1, kind: input, shape index: {}]   ;;  %s336_s2 = inlined_call_operand.vmem [shape: f32[10,1], index: 2, kind: input, shape index: {}]   ;;  %s337_s3 = inlined_call_operand.vmem [shape: f32[3,10], index: 3, kind: input, shape index: {}]   ;;  %s338_s4 = inlined_call_operand.vmem [shape: f32[3,1], index: 4, kind: input, shape index: {}]   ;;  %s339_s5 = inlined_call_operand.hbm [shape: f32[3,8], index: 5, kind: output, shape index: {}]  }
   0x1   :  { %v21_v0 = vld [vmem:[%s334_s0] sm:$0xf]  ;;  %v23_v2 = vld [vmem:[%s335_s1 + $0x8] sm:$0x3]  ;;  %252 = vset.pattern.permute.xlu0 %v276_v4 }
   0x2   :  { %v22_v1 = vld [vmem:[%s335_s1] sm:$0xff]  ;;  %236 = vmatprep.subr.msk.mxu0 %vm43_vm0, %v21_v0  ;;  %v25_v3 = vld [vmem:[%s336_s2 + $0x8] sm:$0x3] }
   0x3   :  { %238 = vmatprep.mubr.msk.f32.mxu0 %vm36_vm1, %v22_v1  ;;  %237 = vmatpush3.msk.msra.mxu0 %vm43_vm0, %v21_v0 }
   0x4   :  { %10 = vsyncpa [#allocation3], 0  ;;  %239 = vmatmul.mubr.msk.f32.vlgmr.msra.gmra.mxu0 %vm36_vm1, %v23_v2  ;;  %33 = vperm.xlu0 %252, %v25_v3   ;;  %v24_v5 = vld [vmem:[%s336_s2] sm:$0xff]  ;;  %v277_v6 = vmov 0.0   ;;  %vm278_vm2 = vmmov 0   ;;  %vm135_vm3 = vcmask 1041408  }
   0x5   :  { %253 = vset.pattern.permute.xlu1 %v276_v4  ;;  %241 = vmatprep.subr.mxu1 %v277_v6  ;;  %v125_v7 = vld [vmem:[%s338_s4] sm:$0x7]  ;;  %vm131_vm4 = vcmask 80896   ;;  %s279_s4 = smov [#allocation2]   ;;  %vm209_vm5 = vcmask 59392  }
   0x6   :  { %245 = vmatprep.mubr.msk.f32.mxu1 %vm278_vm2, %v277_v6  ;;  %128 = vperm.xlu1 %253, %v125_v7   ;;  %v124_v16 = vld [vmem:[%s337_s3] sm:$0x7]  ;;  %s217_s29 = sshll.u32 %s279_s4, 4  ;;  %s218_s29 = int_to_ptr.vmem [resolvable:$true] %s217_s29 }
   0x7   :  { %s254_s30 = scalar_lea.vmem %s218_s29, 64  ;;  %p259_p1 = scmp.lt.s32.totalorder %s218_s29, %s218_s29 }
   0x8   :  { %28 = vperm.xlu0 %252, %v24_v5   ;;  %p255_p0 = scmp.ne.s32.totalorder %s218_s29, %s254_s30  ;;  %p260_p2 = scmp.lt.s32.totalorder %s254_s30, %s254_s30 }
   0xa   :  { %p261_p3 = por %p260_p2, %p259_p1 }
   0xc   :  { %p262_p4 = pnand %p261_p3, %p255_p0 }
  0x7f   :  { %v34_v8 = vpop.permute.xlu0 %33 }
  0x81   :  { %v129_v17 = vpop.permute.xlu1 %128 }
  0x83   :  { %v29_v11 = vpop.permute.xlu0 %28 }
  0xc4   :  { %v240_v9 = vpop.f32.mrf.mxu0 }
  0xc5   :  { %v119_v10 = vadd.f32 %v240_v9, %v34_v8 }
  0xc6   :  { %v113_v12 = vpop.f32.mrf.mxu0 }
  0xc7   :  { %v123_v13 = vmax.f32 %v119_v10, 0.0  ;;  %v114_v14 = vadd.f32 %v113_v12, %v29_v11 }
  0xc9   :  { %v122_v15 = vmax.f32 %v114_v14, 0.0  ;;  %242 = vmatpush3.msk.msra.mxu1 %vm135_vm3, %v123_v13 }
  0xca   :  { %243 = vmatprep.subr.mxu1 %v277_v6 }
  0xcb   :  { %244 = vmatpush3.msra.mxu1 %v122_v15 }
  0xcc   :  { %246 = vmatmul.mubr.msk.f32.vlgmr.msra.gmra.mxu1 %vm131_vm4, %v124_v16 }
 0x18c   :  { %v205_v18 = vpop.f32.mrf.mxu1 }
 0x18d   :  { %v206_v19 = vadd.f32 %v205_v18, %v129_v17 }
 0x18e   :  { %v247_v20 = vpop.f32.mrf.mxu1 }
 0x18f   :  { %210 = vst.msk [vmem:[#allocation2] sm:$0x7] %vm209_vm5, %v206_v19 }
 0x190   :  { %265 = shalt.err (!%p262_p4)
}
 0x191   :  { %220 = dma.vmem_to_hbm [thread:$0]  %s218_s29, 64, %s339_s5, [#allocation3]  }
 0x192   :  { %274 = dma.done.wait [#allocation3], 64  }
 0x193   :  { %275 = vsyncadd [#allocation3], 4294967232 }
 0x194   :  { %224 = vsyncpa [#allocation3], 1 }

</bundles_post_ra>
